<compile_context>
chip_gen: v7x
topology: tpu7x:2x2x1
jax: 0.10.0
libtpu: 0.0.40
codegen_flags: <defaults>
</compile_context>

<pallas_src>
import jax
import jax.numpy as jnp
from jax.experimental import pallas as pl
from jax.experimental.pallas import tpu as pltpu

_IN_BYTES = 2    # bf16 patches / folded weights
_OUT_BYTES = 4   # f32 output


def _vmem_capacity_bytes():
    """Physical VMEM per core; conservative fallback if the query is unavailable."""
    try:
        return int(pltpu.get_tpu_info().vmem_capacity_bytes)
    except Exception:
        return 64 * 1024 * 1024   # v7x per-TC physical VMEM (smallest generation)


def _choose_tiles(n, k, cout, hw, budget_bytes):
    """Pick (images-per-step NB, HW tile HW_T) for the 2-D grid."""

    def block_bytes(nb, hw_t):
        # Double-buffered patch-input + output blocks for one grid step.
        return 2 * nb * hw_t * (k * _IN_BYTES + cout * _OUT_BYTES)

    # 1) HW tile: full image if it fits, else the largest 128-multiple divisor.
    hw_t = hw
    if block_bytes(1, hw) > budget_bytes and hw % 128 == 0:
        hw_t = 128
        for cand in range(hw - 128, 127, -128):
            if hw % cand == 0 and block_bytes(1, cand) <= budget_bytes:
                hw_t = cand
                break
    # (If HW is not a 128-multiple and a single image overflows the budget we fall
    #  back to a full-HW block — degenerate, not hit at these shapes.)

    # 2) Images per step: as many as fit the budget (no artificial cap).
    nb = max(1, min(n, budget_bytes // max(block_bytes(1, hw_t), 1)))

    # 3) Guarantee >=2 grid steps so v7x can shard the parallel axes over both
    #    TensorCores (no cost on v5e/v6e, which have a single TC).
    def steps(nb_, hw_t_):
        return (-(-n // nb_)) * (hw // hw_t_)

    if steps(nb, hw_t) < 2:
        if n >= 2:
            nb = -(-n // 2)
        elif hw % 256 == 0:
            hw_t = hw // 2
    return nb, hw_t


def _conv_bn_relu_kernel(p_ref, w_ref, b_ref, o_ref):
    """One grid step: NB images x one HW tile.

    p_ref: (NB, 9*Cin, HW_T)  bf16 im2col patches
    w_ref: (Cout, 9*Cin)      bf16 BN-scale-folded conv weights
    b_ref: (Cout, 1)          f32 folded bias (conv bias + BN shift)
    o_ref: (NB, Cout, HW_T)   f32 output (lane-dense; already NCHW once reshaped)
    """
    nb, cout, _ = o_ref.shape
    k = w_ref.shape[1]
    # One batched contraction per grid step (lhs broadcast is a cheap in-VMEM
    # replication of the small weight tile); MXU accumulates in f32.
    w = jnp.broadcast_to(w_ref[...][None], (nb, cout, k))
    acc = jnp.einsum('nok,nkm->nom', w, p_ref[...],
                     preferred_element_type=jnp.float32)
    # Fused epilogue: folded bias + ReLU.  Dropout(0.2) is identity in eval mode.
    o_ref[...] = jnp.maximum(acc + b_ref[...], 0.0).astype(o_ref.dtype)


@jax.jit
def conv_ucolor_forward(x_nchw, w_oihw, conv_bias, gamma, beta,
                        running_mean, running_var, eps=1e-5):
    """Pallas implementation of conv_Ucolor.forward (inference mode)."""
    N, Cin, H, W = x_nchw.shape
    Cout = w_oihw.shape[0]
    K = 9 * Cin
    HW = H * W

    # --- glue (plain JAX): im2col, BN folding, bf16 casts --------------------
    x = x_nchw.astype(jnp.float32)
    x_pad = jnp.pad(x, ((0, 0), (0, 0), (1, 1), (1, 1)))          # (N, Cin, H+2, W+2)
    taps = [x_pad[:, :, kh:kh + H, kw:kw + W]                     # tap order kh*3+kw
            for kh in range(3) for kw in range(3)]
    patches = jnp.concatenate(taps, axis=1).reshape(N, K, HW)     # (N, 9*Cin, H*W)
    patches = patches.astype(jnp.bfloat16)

    inv_std = jax.lax.rsqrt(running_var.astype(jnp.float32) + eps)
    scale = gamma.astype(jnp.float32) * inv_std                   # (Cout,)
    # Fold BN scale into the conv weights; fold conv bias + BN shift into one bias.
    w_f = w_oihw.astype(jnp.float32) * scale[:, None, None, None]         # (Cout,Cin,3,3)
    w_mat = jnp.transpose(w_f, (0, 2, 3, 1)).reshape(Cout, K).astype(jnp.bfloat16)
    bias = (beta.astype(jnp.float32)
            + (conv_bias.astype(jnp.float32) - running_mean.astype(jnp.float32))
            * scale).reshape(Cout, 1)

    # --- generation-aware block sizing ---------------------------------------
    capacity = _vmem_capacity_bytes()
    budget = int(0.40 * capacity)          # ~51 MiB on v5e/v6e, ~25 MiB on v7x
    NB, HW_T = _choose_tiles(N, K, Cout, HW, budget)

    n_blocks = -(-N // NB)
    N_pad = n_blocks * NB
    if N_pad != N:                          # pad batch instead of collapsing NB
        patches = jnp.pad(patches, ((0, N_pad - N), (0, 0), (0, 0)))

    block_need = 2 * NB * HW_T * (K * _IN_BYTES + Cout * _OUT_BYTES)
    static_need = 2 * (Cout * K * _IN_BYTES + Cout * _OUT_BYTES)
    vmem_limit = min(max(block_need + static_need + 8 * 1024 * 1024,
                         32 * 1024 * 1024),
                     int(0.75 * capacity))

    cost = pl.CostEstimate(
        flops=2 * N_pad * Cout * K * HW,
        transcendentals=0,
        bytes_accessed=(N_pad * K * HW * _IN_BYTES
                        + N_pad * Cout * HW * _OUT_BYTES
                        + Cout * K * _IN_BYTES + Cout * 4))

    out = pl.pallas_call(
        _conv_bn_relu_kernel,
        out_shape=jax.ShapeDtypeStruct((N_pad, Cout, HW), jnp.float32),
        grid_spec=pltpu.PrefetchScalarGridSpec(
            num_scalar_prefetch=0,
            grid=(n_blocks, HW // HW_T),
            in_specs=[
                # NOTE: on v5e, if profiling shows the patch DMA exposed at small
                # blocks, add pipeline_mode=pl.Buffered(3) here and sweep 2 vs 3.
                pl.BlockSpec((NB, K, HW_T), lambda i, j: (i, 0, j)),
                pl.BlockSpec((Cout, K), lambda i, j: (0, 0)),
                pl.BlockSpec((Cout, 1), lambda i, j: (0, 0)),
            ],
            out_specs=pl.BlockSpec((NB, Cout, HW_T), lambda i, j: (i, 0, j)),
        ),
        compiler_params=pltpu.CompilerParams(
            dimension_semantics=("parallel", "parallel"),
            vmem_limit_bytes=vmem_limit),
        cost_estimate=cost,
    )(patches, w_mat, bias)

    out = out[:N]
    # Output is already NCHW-ordered; reshape is free (contiguous).
    return out.reshape(N, Cout, H, W)


def _reference_forward(x_nchw, w_oihw, conv_bias, gamma, beta,
                       running_mean, running_var, eps=1e-5):
    """Pure-JAX f32 reference (lax conv) for correctness checking."""
    y = jax.lax.conv_general_dilated(
        x_nchw.astype(jnp.float32), w_oihw.astype(jnp.float32),
        window_strides=(1, 1), padding=((1, 1), (1, 1)),
        dimension_numbers=("NCHW", "OIHW", "NCHW"))
    y = y + conv_bias.reshape(1, -1, 1, 1)
    inv_std = jax.lax.rsqrt(running_var + eps)
    y = (y - running_mean.reshape(1, -1, 1, 1)) * (gamma * inv_std).reshape(1, -1, 1, 1)
    y = y + beta.reshape(1, -1, 1, 1)
    return jnp.maximum(y, 0.0)


if __name__ == "__main__":
    key = jax.random.PRNGKey(0)
    k_x, k_w, k_b, k_g, k_be, k_m, k_v = jax.random.split(key, 7)

    N, Cin, Cout, H, W = 2, 4, 8, 16, 16

    x = jax.random.normal(k_x, (N, Cin, H, W), dtype=jnp.float32)

    # Deterministic synthetic parameters (shapes per nn.Conv2d / nn.BatchNorm2d).
    w = jax.random.normal(k_w, (Cout, Cin, 3, 3), dtype=jnp.float32) * 0.1
    conv_bias = jax.random.normal(k_b, (Cout,), dtype=jnp.float32) * 0.1
    gamma = 1.0 + 0.1 * jax.random.normal(k_g, (Cout,), dtype=jnp.float32)
    beta = 0.1 * jax.random.normal(k_be, (Cout,), dtype=jnp.float32)
    running_mean = 0.1 * jax.random.normal(k_m, (Cout,), dtype=jnp.float32)
    running_var = jnp.abs(jax.random.normal(k_v, (Cout,), dtype=jnp.float32)) + 0.5

    out = conv_ucolor_forward(x, w, conv_bias, gamma, beta,
                              running_mean, running_var)
    out = jax.block_until_ready(out)

    ref = _reference_forward(x, w, conv_bias, gamma, beta,
                             running_mean, running_var)
    ref = jax.block_until_ready(ref)

    assert out.shape == (N, Cout, H, W), out.shape
    # Tolerance loosened vs the f32 reference because patches/weights are bf16
    # (f32 accumulation); observed error is O(1e-3) at these shapes.
    assert jnp.allclose(out, ref, atol=2e-2, rtol=2e-2), \
        float(jnp.max(jnp.abs(out - ref)))

    print("KERNEL_OK")
</pallas_src>

<mosaic_0001>
module attributes {stable_mosaic.version = 11 : i64} {
  func.func @_conv_bn_relu_kernel(%arg0: i32, %arg1: i32, %arg2: memref<1x36x256xbf16, #tpu.memory_space<vmem>>, %arg3: memref<8x36xbf16, #tpu.memory_space<vmem>>, %arg4: memref<8x1xf32, #tpu.memory_space<vmem>>, %arg5: memref<1x8x256xf32, #tpu.memory_space<vmem>>) attributes {dimension_semantics = [#tpu.dimension_semantics<parallel>, #tpu.dimension_semantics<parallel>], iteration_bounds = array<i64: 2, 1>, scalar_prefetch = 0 : i64, scratch_operands = 0 : i64, tpu.core_type = #tpu.core_type<tc>, window_params = [{transform_indices = @transform_0, window_bounds = array<i64: 1, 36, 256>}, {pipeline_mode = #tpu.pipeline_mode<synchronous>, transform_indices = @transform_1, window_bounds = array<i64: 8, 36>}, {pipeline_mode = #tpu.pipeline_mode<synchronous>, transform_indices = @transform_2, window_bounds = array<i64: 8, 1>}, {transform_indices = @transform_3, window_bounds = array<i64: 1, 8, 256>}]} {
    %c0 = arith.constant 0 : index
    %c0_0 = arith.constant 0 : index
    %0 = vector.load %arg3[%c0, %c0_0] : memref<8x36xbf16, #tpu.memory_space<vmem>>, vector<8x36xbf16>
    %1 = vector.shape_cast %0 : vector<8x36xbf16> to vector<1x8x36xbf16>
    %c0_1 = arith.constant 0 : index
    %c0_2 = arith.constant 0 : index
    %c0_3 = arith.constant 0 : index
    %2 = vector.load %arg2[%c0_1, %c0_2, %c0_3] : memref<1x36x256xbf16, #tpu.memory_space<vmem>>, vector<1x36x256xbf16>
    "tpu.trace_start"() <{level = 10 : i32, message = "nok,nkm->nom"}> : () -> ()
    %cst = arith.constant dense<0.000000e+00> : vector<1x8x256xf32>
    %3 = tpu.matmul %1, %2, %cst {dimension_numbers = #tpu.dot_dimension_numbers<[2], [1], [1], [2], [0, 0, 0, 1, 1, 2], [0], [0]>} : vector<1x8x36xbf16>, vector<1x36x256xbf16>, vector<1x8x256xf32> -> vector<1x8x256xf32>
    "tpu.trace_stop"() : () -> ()
    %c0_4 = arith.constant 0 : index
    %c0_5 = arith.constant 0 : index
    %4 = vector.load %arg4[%c0_4, %c0_5] : memref<8x1xf32, #tpu.memory_space<vmem>>, vector<8x1xf32>
    %5 = vector.shape_cast %4 : vector<8x1xf32> to vector<1x8x1xf32>
    %6 = vector.broadcast %5 : vector<1x8x1xf32> to vector<1x8x256xf32>
    %7 = arith.addf %3, %6 : vector<1x8x256xf32>
    %cst_6 = arith.constant 0.000000e+00 : f32
    %8 = vector.broadcast %cst_6 : f32 to vector<1x8x256xf32>
    %9 = arith.maximumf %7, %8 : vector<1x8x256xf32>
    %c0_7 = arith.constant 0 : index
    %c0_8 = arith.constant 0 : index
    %c0_9 = arith.constant 0 : index
    %10 = vector.load %arg5[%c0_7, %c0_8, %c0_9] : memref<1x8x256xf32, #tpu.memory_space<vmem>>, vector<1x8x256xf32>
    tpu.vector_store %arg5[%c0_7, %c0_8, %c0_9], %9 {strides = array<i32>} : memref<1x8x256xf32, #tpu.memory_space<vmem>>, vector<1x8x256xf32>,
    return
  }
  func.func @transform_0(%arg0: i32, %arg1: i32) -> (i32, i32, i32) {
    %c0_i32 = arith.constant 0 : i32
    %c0_i32_0 = arith.constant 0 : i32
    return %arg0, %c0_i32, %arg1 : i32, i32, i32
  }
  func.func @transform_1(%arg0: i32, %arg1: i32) -> (i32, i32) {
    %c0_i32 = arith.constant 0 : i32
    %c0_i32_0 = arith.constant 0 : i32
    %c0_i32_1 = arith.constant 0 : i32
    return %c0_i32, %c0_i32_0 : i32, i32
  }
  func.func @transform_2(%arg0: i32, %arg1: i32) -> (i32, i32) {
    %c0_i32 = arith.constant 0 : i32
    %c0_i32_0 = arith.constant 0 : i32
    %c0_i32_1 = arith.constant 0 : i32
    return %c0_i32, %c0_i32_0 : i32, i32
  }
  func.func @transform_3(%arg0: i32, %arg1: i32) -> (i32, i32, i32) {
    %c0_i32 = arith.constant 0 : i32
    %c0_i32_0 = arith.constant 0 : i32
    return %arg0, %c0_i32, %arg1 : i32, i32, i32
  }
}

</mosaic_0001>

<bundles_post_ra>
// kernel: conv_ucolor_forward.1
= control target key start
LH: loop header
LB: loop body
LE: loop exit
PB: predicated region body
PF: predicated region fallthrough
CT: control target
= control target key end

     0   :  { %s490_s12 = smov 0   ;;  %s492_s13 = smov 0   ;;  %s529_s0 = inlined_call_operand.vmem [shape: bf16[2,36,256], index: 0, kind: input, shape index: {}]   ;;  %s530_s1 = inlined_call_operand.vmem [shape: bf16[8,36], index: 1, kind: input, shape index: {}]   ;;  %s531_s2 = inlined_call_operand.vmem [shape: f32[8,1], index: 2, kind: input, shape index: {}]   ;;  %s532_s3 = inlined_call_operand.vmem [shape: f32[2,8,256], index: 3, kind: output, shape index: {}]  }
   0x1   :  { %s494_s14 = smov 0  }
   0x2 LB: > { %s25_s15 = sadd.s32 1, %s463_s13  ;;  %p395_p0 = scmp.ge.s32.totalorder %s467_s14, 1  ;;  %s467_s14 = sphi %s494_s14, %s13_s14   ;;  %s463_s13 = sphi %s492_s13, %s534_s13   ;;  %s459_s12 = sphi %s490_s12, %s533_s12  }
   0x3   : > { %p27_p1 = scmp.ge.s32.totalorder %s25_s15, 2  ;;  %p158_p2 = scmp.lt.s32.totalorder %s467_s14, 3 }
   0x5   : > { %s536_s15 = smov (%p27_p1, %s25_s15), 0  ;;  %p159_p3 = pnand %p395_p0, %p158_p2 }
   0x6   : > { %p191_p4 = scmp.lt.s32.totalorder (!%p159_p3), %s459_s12, 1  ;;  %v469_v0 = vmov (!%p159_p3), 0   ;;  %v217_v1 = vld [vmem:[%s531_s2] sm:$0xff] (!%p159_p3)  ;;  %vm252_vm0 = vcmask (!%p159_p3), 1041408   ;;  %vm248_vm1 = vcmask (!%p159_p3), 293888  }
   0x7   : > { %162 = sbr.rel (%p159_p3) target bundleno = 249 (0xf9), region = 32  ;;  %291 = vmatprep.mubr.bf16.mxu0 (!%p159_p3), %v469_v0  ;;  %436 = vset.pattern.permute.xlu0 (!%p159_p3), %v469_v0  ;;  %v211_v10 = vld [vmem:[%s530_s1] sm:$0xf] (!%p159_p3) }
   0x8   : > { %220 = vperm.xlu0 (!%p159_p3), %436, %v217_v1  }
   0xe   : > { %s538_s12 = smov (!%p191_p4, %s459_s12), 1 }
   0xf   : > { %s410_s18 = smul.u32 40, %s538_s12  ;;  %s409_s24 = sshll.u32 %s538_s12, 4 }
  0x10   : > { %s208_s27 = scalar_lea.vmem %s532_s3, %s409_s24 }
  0x11   : > { %s198_s21 = scalar_lea.vmem %s529_s0, %s410_s18 }
  0x12   : > { %v437_v2 = vld [vmem:[%s198_s21 + $0x4] ss:$8 sps:$4 sm:$0xff]   ;;  %v439_v3 = vld [vmem:[%s198_s21] ss:$8 sps:$4 sm:$0xff]   ;;  %v440_v4 = vld [vmem:[%s198_s21 + $0x14] ss:$8 sps:$4 sm:$0xff]  }
  0x13   : > { %259 = vmatprep.subr.bf16.mxu0 %v437_v2  ;;  %v216_v5 = vld [vmem:[%s198_s21 + $0x20] sm:$0x33]  ;;  %v442_v6 = vld [vmem:[%s198_s21 + $0x10] ss:$8 sps:$4 sm:$0xff]  }
  0x14   : > { %260 = vmatpush1.bf16.msra.mxu0 %v439_v3  ;;  %v404_v7 = vcombine.high %v216_v5, %v216_v5  ;;  %v403_v8 = vcombine.low %v216_v5, %v216_v5 }
  0x15   : > { %261 = vmatprep.subr.bf16.mxu0 %v440_v4 }
  0x16   : > { %v254_v9 = vsel %vm252_vm0, %v403_v8, 0 }
  0x18   : > { %262 = vmatpush1.bf16.msra.mxu0 %v442_v6 }
  0x19   : > { %405 = vmatprep.subr.msk.bf16.mxu0 %vm252_vm0, %v404_v7 }
  0x1c   : > { %264 = vmatpush1.bf16.msra.mxu0 %v254_v9 }
  0x1f   : > { %406 = vmatmul.mubr.msk.bf16.vlgmr.msra.gmra.mrb[0].mxu0 %vm248_vm1, %v211_v10 }
  0x87   : > { %v221_v11 = vpop.permute.xlu0 %220 }
  0xf2   : > { %v293_v12 = vpop.f32.mrb[0].mxu0 }
  0xf3   : > { %v294_v13 = vadd.f32 %v293_v12, %v221_v11  ;;  %v295_v14 = vpop.f32.mrb[1].mxu0 }
  0xf4   : > { %v296_v15 = vadd.f32 %v295_v14, %v221_v11  ;;  %v297_v16 = vpop.f32.mrb[2].mxu0 }
  0xf5   : > { %v300_v17 = vmax.f32 %v294_v13, 0.0  ;;  %v298_v18 = vpop.f32.mrb[3].mxu0 }
  0xf6   : > { %v301_v19 = vmax.f32 %v296_v15, 0.0 }
  0xf7   : > { %302 = vst [vmem:[%s208_s27] sm:$0xff] %v300_v17 }
  0xf8   : > { %303 = vst [vmem:[%s208_s27 + $0x8] sm:$0xff] %v301_v19 }
  0xf9 PF: > { %s13_s14 = sadd.s32 1, %s467_s14   ;;  %s533_s12 = smov %s463_s13 }
  0xfa   : > { %p10_p5 = scmp.ge.s32.totalorder %s13_s14, 4   ;;  %s534_s13 = smov %s536_s15 }
  0xfc   :  { %12 = sbr.rel (!%p10_p5) target bundleno = 2 (0x2), region = 62 }

</bundles_post_ra>
